<compile_context>
chip_gen: v5e
topology: v5e:2x2
jax: 0.10.0
libtpu: 0.0.40
codegen_flags: <defaults>
</compile_context>

<pallas_src>
import functools

import jax
import jax.numpy as jnp
from jax import lax
from jax.experimental import pallas as pl
from jax.experimental.pallas import tpu as pltpu


# ----------------------------------------------------------------------------
# Kernel: one (agent, column-tile) cell of the fused Q/V forward.
# All operands are transposed: features on sublanes, bs*ts columns on lanes.
# ----------------------------------------------------------------------------
def qtran_kernel(state_ref, act_ref, w1s_ref, w1a_ref, b1_ref,
                 w2_ref, b2_ref, w3_ref, b3_ref, o_ref, *, embed_dim):
    # Layer 1 (Q and V fused along the row axis; V sees only the state part).
    h1 = jnp.dot(w1s_ref[...], state_ref[...], preferred_element_type=jnp.float32)
    h1 = h1 + jnp.dot(w1a_ref[0], act_ref[...], preferred_element_type=jnp.float32)
    h1 = jnp.maximum(h1 + b1_ref[0], 0.0)                       # (2E, tb)

    # Layer 2: block-diagonal fusion of Q's hidden layer and V's output layer.
    h2 = jnp.dot(w2_ref[...], h1, preferred_element_type=jnp.float32) + b2_ref[...]  # (E+1, tb)

    # Selective ReLU: Q rows (first E) get ReLU, the V row passes through linearly.
    row = lax.broadcasted_iota(jnp.int32, h2.shape, 0)
    h2 = jnp.where(row < embed_dim, jnp.maximum(h2, 0.0), h2)

    # Layer 3: Q head + identity pass-through for V -> [q | v] in one matmul,
    # written lane-dense (lane dim = column tile).
    out = jnp.dot(w3_ref[...], h2, preferred_element_type=jnp.float32) + b3_ref[...]  # (A+1, tb)
    o_ref[0] = out.astype(o_ref.dtype)


# ----------------------------------------------------------------------------
# Column-tile selection over the bs*ts axis.
# ----------------------------------------------------------------------------
def _round_up(x, m):
    return ((x + m - 1) // m) * m


def _choose_col_tile(n_cols, tb_max=4096):
    """Single full-width tile for small problems (no padding, no extra grid
    steps on 1-TC chips); otherwise large 128-aligned tiles, preferring an even
    tile count so a 2-TC chip can split the parallel axis evenly."""
    if n_cols <= tb_max:
        return n_cols, n_cols
    n_tiles = pl.cdiv(n_cols, tb_max)
    if n_tiles > 1 and n_tiles % 2:
        n_tiles += 1
    tb = _round_up(pl.cdiv(n_cols, n_tiles), 128)
    n_tiles = pl.cdiv(n_cols, tb)
    return tb, n_tiles * tb


# ----------------------------------------------------------------------------
# Pallas wrapper.
# ----------------------------------------------------------------------------
def qtran_pallas(state_T, act_T, packed, n_agents, n_actions, embed_dim, tb_max=4096):
    S, B = state_T.shape
    nA = act_T.shape[0]
    E = embed_dim
    A = n_actions

    tb, B_pad = _choose_col_tile(B, tb_max)
    if B_pad != B:
        # Only the small, non-duplicated source arrays are ever padded, and only
        # when bs*ts does not fit a single tile.
        state_T = jnp.pad(state_T, ((0, 0), (0, B_pad - B)))
        act_T = jnp.pad(act_T, ((0, 0), (0, B_pad - B)))
    n_col_tiles = B_pad // tb

    const = lambda j, a: (0, 0)
    in_specs = [
        pl.BlockSpec((S, tb), lambda j, a: (0, j)),              # state^T (shared across agents)
        pl.BlockSpec((nA, tb), lambda j, a: (0, j)),             # actions^T (shared across agents)
        pl.BlockSpec((2 * E, S), const),                         # fused layer-1 state weights
        pl.BlockSpec((1, 2 * E, nA), lambda j, a: (a, 0, 0)),    # per-agent masked action weights
        pl.BlockSpec((1, 2 * E, 1), lambda j, a: (a, 0, 0)),     # per-agent bias (+agent-id term)
        pl.BlockSpec((E + 1, 2 * E), const),                     # fused layer-2 weights
        pl.BlockSpec((E + 1, 1), const),
        pl.BlockSpec((A + 1, E + 1), const),                     # fused Q head / V pass-through
        pl.BlockSpec((A + 1, 1), const),
    ]
    out_specs = pl.BlockSpec((1, A + 1, tb), lambda j, a: (a, 0, j))
    out_shape = jax.ShapeDtypeStruct((n_agents, A + 1, B_pad), jnp.float32)

    out = pl.pallas_call(
        functools.partial(qtran_kernel, embed_dim=embed_dim),
        out_shape=out_shape,
        grid=(n_col_tiles, n_agents),
        in_specs=in_specs,
        out_specs=out_specs,
        compiler_params=pltpu.CompilerParams(
            dimension_semantics=("parallel", "arbitrary")),
    )(state_T, act_T, packed["w1s"], packed["w1a"], packed["b1"],
      packed["w2"], packed["b2"], packed["w3"], packed["b3"])

    return out[:, :, :B]                                          # (n_agents, A+1, B)


# ----------------------------------------------------------------------------
# One-time weight packing (outside the kernel).  Params are stored as
# (in_features, out_features) + (1, out_features) biases; here they are
# transposed and fused into the kernel's feature-major layout.
# ----------------------------------------------------------------------------
def pack_params(p, state_dim, n_agents, n_actions, embed_dim):
    E, S, A = embed_dim, state_dim, n_actions
    nA = n_agents * n_actions
    f32 = jnp.float32

    qw1 = p["qw1"]                       # (S + nA + n_agents, E)
    qw1_s = qw1[:S].T                    # (E, S)
    qw1_a = qw1[S:S + nA].T              # (E, nA)
    qw1_id = qw1[S + nA:].T              # (E, n_agents)

    # Layer-1 state weights, Q rows on top / V rows below: (2E, S)
    w1s = jnp.concatenate([qw1_s, p["vw1"].T], axis=0).astype(f32)

    # Per-agent action weights with the agent's own action columns zeroed
    # (exactly reproduces the agent_mask); V rows are zero: (n_agents, 2E, nA)
    own = (jnp.arange(nA)[None, :] // A) == jnp.arange(n_agents)[:, None]
    w1a_q = jnp.where(own[:, None, :], 0.0, qw1_a[None])
    w1a = jnp.concatenate([w1a_q, jnp.zeros((n_agents, E, nA), f32)], axis=1).astype(f32)

    # Per-agent layer-1 bias with the agent-id one-hot contribution folded in:
    # (n_agents, 2E, 1)
    b1_q = p["qb1"].T + qw1_id                                   # (E, n_agents)
    b1_v = jnp.broadcast_to(p["vb1"].T, (E, n_agents))
    b1 = jnp.concatenate([b1_q, b1_v], axis=0).T[:, :, None].astype(f32)

    # Layer 2: block-diag(Q hidden layer, V output layer): (E+1, 2E)
    w2 = jnp.zeros((E + 1, 2 * E), f32)
    w2 = w2.at[:E, :E].set(p["qw2"].T).at[E:, E:].set(p["vw2"].T)
    b2 = jnp.concatenate([p["qb2"].T, p["vb2"].T], axis=0).astype(f32)   # (E+1, 1)

    # Layer 3: Q head + unit pass-through for V: (A+1, E+1)
    w3 = jnp.zeros((A + 1, E + 1), f32)
    w3 = w3.at[:A, :E].set(p["qw3"].T).at[A, E].set(1.0)
    b3 = jnp.concatenate([p["qb3"].T, jnp.zeros((1, 1), f32)], axis=0)   # (A+1, 1)

    return dict(w1s=w1s, w1a=w1a, b1=b1, w2=w2, b2=b2, w3=w3, b3=b3)


# ----------------------------------------------------------------------------
# Forward: matches QTran.forward(batch) -> (q_outputs, v_outputs).
# ----------------------------------------------------------------------------
def qtran_forward(state, actions_onehot, params, n_agents, n_actions, embed_dim,
                  tb_max=4096):
    bs, ts, state_dim = state.shape
    B = bs * ts
    N = B * n_agents
    A = n_actions
    nA = n_agents * n_actions

    packed = pack_params(params, state_dim, n_agents, n_actions, embed_dim)

    # Non-duplicated, feature-major kernel inputs (tiny transposes at bs*ts
    # granularity; the n_agents-fold duplication / masking / agent-id concat is
    # done algebraically inside the kernel instead of in HBM).
    state_T = state.reshape(B, state_dim).T                       # (S, B)
    act_T = actions_onehot.reshape(B, nA).T                       # (nA, B)

    out = qtran_pallas(state_T, act_T, packed, n_agents, n_actions, embed_dim,
                       tb_max=tb_max)                             # (n_agents, A+1, B)

    # Back to the module's row ordering: row n = (b*ts + t) * n_agents + a.
    out = jnp.transpose(out, (2, 0, 1)).reshape(N, A + 1)
    return out[:, :A], out[:, A:]


# ----------------------------------------------------------------------------
# Deterministic parameter init (PyTorch-Linear-like uniform ranges), stored as
# (in_features, out_features) + (1, out_features).
# ----------------------------------------------------------------------------
def init_params(key, state_dim, n_agents, n_actions, embed_dim):
    q_in = state_dim + n_agents * n_actions + n_agents

    def linear(key, fan_in, fan_out):
        kw, kb = jax.random.split(key)
        bound = 1.0 / jnp.sqrt(fan_in)
        w = jax.random.uniform(kw, (fan_in, fan_out), jnp.float32, -bound, bound)
        b = jax.random.uniform(kb, (1, fan_out), jnp.float32, -bound, bound)
        return w, b

    keys = jax.random.split(key, 5)
    qw1, qb1 = linear(keys[0], q_in, embed_dim)
    qw2, qb2 = linear(keys[1], embed_dim, embed_dim)
    qw3, qb3 = linear(keys[2], embed_dim, n_actions)
    vw1, vb1 = linear(keys[3], state_dim, embed_dim)
    vw2, vb2 = linear(keys[4], embed_dim, 1)
    return dict(qw1=qw1, qb1=qb1, qw2=qw2, qb2=qb2, qw3=qw3, qb3=qb3,
                vw1=vw1, vb1=vb1, vw2=vw2, vb2=vb2)


# ----------------------------------------------------------------------------
# Pure-JAX reference mirroring the torch module (unfused, duplicated inputs).
# ----------------------------------------------------------------------------
def reference_forward(state, actions_onehot, p, n_agents, n_actions):
    bs, ts, state_dim = state.shape
    N = bs * ts * n_agents

    repeated_states = jnp.tile(state[:, :, None, :],
                               (1, 1, n_agents, 1)).reshape(N, state_dim)
    actions = jnp.tile(actions_onehot, (1, 1, n_agents, 1))
    agent_mask = 1.0 - jnp.eye(n_agents, dtype=state.dtype)
    agent_mask = jnp.repeat(agent_mask.reshape(-1, 1), n_actions, axis=1)
    masked_actions = (actions * agent_mask[None, None]).reshape(
        N, n_agents * n_actions)
    agent_ids = jnp.tile(jnp.eye(n_agents, dtype=state.dtype)[None, None],
                         (bs, ts, 1, 1)).reshape(N, n_agents)
    inputs = jnp.concatenate([repeated_states, masked_actions, agent_ids], axis=1)

    relu = lambda x: jnp.maximum(x, 0.0)
    h = relu(inputs @ p["qw1"] + p["qb1"])
    h = relu(h @ p["qw2"] + p["qb2"])
    q = h @ p["qw3"] + p["qb3"]
    hv = relu(repeated_states @ p["vw1"] + p["vb1"])
    v = hv @ p["vw2"] + p["vb2"]
    return q, v


if __name__ == "__main__":
    # Small config consistent with the module: network_size='small'
    bs, ts = 2, 8
    n_agents, n_actions = 4, 8
    state_dim = 32
    embed_dim = 32

    key = jax.random.PRNGKey(0)
    k_state, k_act, k_param = jax.random.split(key, 3)

    state = jax.random.normal(k_state, (bs, ts, state_dim), jnp.float32)
    act_idx = jax.random.randint(k_act, (bs, ts, n_agents), 0, n_actions)
    actions_onehot = jax.nn.one_hot(act_idx, n_actions, dtype=jnp.float32)

    params = init_params(k_param, state_dim, n_agents, n_actions, embed_dim)

    q_out, v_out = qtran_forward(state, actions_onehot, params,
                                 n_agents, n_actions, embed_dim)
    jax.block_until_ready((q_out, v_out))

    q_ref, v_ref = reference_forward(state, actions_onehot, params,
                                     n_agents, n_actions)
    assert q_out.shape == (bs * ts * n_agents, n_actions)
    assert v_out.shape == (bs * ts * n_agents, 1)
    assert jnp.allclose(q_out, q_ref, atol=1e-4, rtol=1e-4)
    assert jnp.allclose(v_out, v_ref, atol=1e-4, rtol=1e-4)

    print("KERNEL_OK")
</pallas_src>

<mosaic_0001>
module attributes {stable_mosaic.version = 11 : i64} {
  func.func @qtran_kernel(%arg0: i32, %arg1: i32, %arg2: memref<32x16xf32, #tpu.memory_space<vmem>>, %arg3: memref<32x16xf32, #tpu.memory_space<vmem>>, %arg4: memref<64x32xf32, #tpu.memory_space<vmem>>, %arg5: memref<1x64x32xf32, #tpu.memory_space<vmem>>, %arg6: memref<1x64x1xf32, #tpu.memory_space<vmem>>, %arg7: memref<33x64xf32, #tpu.memory_space<vmem>>, %arg8: memref<33x1xf32, #tpu.memory_space<vmem>>, %arg9: memref<9x33xf32, #tpu.memory_space<vmem>>, %arg10: memref<9x1xf32, #tpu.memory_space<vmem>>, %arg11: memref<1x9x16xf32, #tpu.memory_space<vmem>>) attributes {dimension_semantics = [#tpu.dimension_semantics<parallel>, #tpu.dimension_semantics<arbitrary>], iteration_bounds = array<i64: 1, 4>, scalar_prefetch = 0 : i64, scratch_operands = 0 : i64, tpu.core_type = #tpu.core_type<tc>, window_params = [{transform_indices = @transform_0, window_bounds = array<i64: 32, 16>}, {transform_indices = @transform_1, window_bounds = array<i64: 32, 16>}, {pipeline_mode = #tpu.pipeline_mode<synchronous>, transform_indices = @transform_2, window_bounds = array<i64: 64, 32>}, {transform_indices = @transform_3, window_bounds = array<i64: 1, 64, 32>}, {transform_indices = @transform_4, window_bounds = array<i64: 1, 64, 1>}, {pipeline_mode = #tpu.pipeline_mode<synchronous>, transform_indices = @transform_5, window_bounds = array<i64: 33, 64>}, {pipeline_mode = #tpu.pipeline_mode<synchronous>, transform_indices = @transform_6, window_bounds = array<i64: 33, 1>}, {pipeline_mode = #tpu.pipeline_mode<synchronous>, transform_indices = @transform_7, window_bounds = array<i64: 9, 33>}, {pipeline_mode = #tpu.pipeline_mode<synchronous>, transform_indices = @transform_8, window_bounds = array<i64: 9, 1>}, {transform_indices = @transform_9, window_bounds = array<i64: 1, 9, 16>}]} {
    %c0 = arith.constant 0 : index
    %c0_0 = arith.constant 0 : index
    %0 = vector.load %arg4[%c0, %c0_0] : memref<64x32xf32, #tpu.memory_space<vmem>>, vector<64x32xf32>
    %c0_1 = arith.constant 0 : index
    %c0_2 = arith.constant 0 : index
    %1 = vector.load %arg2[%c0_1, %c0_2] : memref<32x16xf32, #tpu.memory_space<vmem>>, vector<32x16xf32>
    %cst = arith.constant dense<0.000000e+00> : vector<64x16xf32>
    %2 = tpu.matmul %0, %1, %cst {dimension_numbers = #tpu.dot_dimension_numbers<[1], [0], [0], [1], [0, 0, 1, 1], [], []>} : vector<64x32xf32>, vector<32x16xf32>, vector<64x16xf32> -> vector<64x16xf32>
    %c0_3 = arith.constant 0 : index
    %c0_4 = arith.constant 0 : index
    %c0_5 = arith.constant 0 : index
    %3 = vector.load %arg5[%c0_3, %c0_4, %c0_5] : memref<1x64x32xf32, #tpu.memory_space<vmem>>, vector<1x64x32xf32>
    %4 = vector.shape_cast %3 : vector<1x64x32xf32> to vector<64x32xf32>
    %c0_6 = arith.constant 0 : index
    %c0_7 = arith.constant 0 : index
    %5 = vector.load %arg3[%c0_6, %c0_7] : memref<32x16xf32, #tpu.memory_space<vmem>>, vector<32x16xf32>
    %cst_8 = arith.constant dense<0.000000e+00> : vector<64x16xf32>
    %6 = tpu.matmul %4, %5, %cst_8 {dimension_numbers = #tpu.dot_dimension_numbers<[1], [0], [0], [1], [0, 0, 1, 1], [], []>} : vector<64x32xf32>, vector<32x16xf32>, vector<64x16xf32> -> vector<64x16xf32>
    %7 = arith.addf %2, %6 : vector<64x16xf32>
    %c0_9 = arith.constant 0 : index
    %c0_10 = arith.constant 0 : index
    %c0_11 = arith.constant 0 : index
    %8 = vector.load %arg6[%c0_9, %c0_10, %c0_11] : memref<1x64x1xf32, #tpu.memory_space<vmem>>, vector<1x64x1xf32>
    %9 = vector.shape_cast %8 : vector<1x64x1xf32> to vector<64x1xf32>
    %10 = vector.broadcast %9 : vector<64x1xf32> to vector<64x16xf32>
    %11 = arith.addf %7, %10 : vector<64x16xf32>
    %cst_12 = arith.constant 0.000000e+00 : f32
    %12 = vector.broadcast %cst_12 : f32 to vector<64x16xf32>
    %13 = arith.maximumf %11, %12 : vector<64x16xf32>
    %c0_13 = arith.constant 0 : index
    %c0_14 = arith.constant 0 : index
    %14 = vector.load %arg7[%c0_13, %c0_14] : memref<33x64xf32, #tpu.memory_space<vmem>>, vector<33x64xf32>
    %cst_15 = arith.constant dense<0.000000e+00> : vector<33x16xf32>
    %15 = tpu.matmul %14, %13, %cst_15 {dimension_numbers = #tpu.dot_dimension_numbers<[1], [0], [0], [1], [0, 0, 1, 1], [], []>} : vector<33x64xf32>, vector<64x16xf32>, vector<33x16xf32> -> vector<33x16xf32>
    %c0_16 = arith.constant 0 : index
    %c0_17 = arith.constant 0 : index
    %16 = vector.load %arg8[%c0_16, %c0_17] : memref<33x1xf32, #tpu.memory_space<vmem>>, vector<33x1xf32>
    %17 = vector.broadcast %16 : vector<33x1xf32> to vector<33x16xf32>
    %18 = arith.addf %15, %17 : vector<33x16xf32>
    %19 = tpu.iota {dimensions = array<i32: 0>} : vector<33x16xi32>
    %c32_i32 = arith.constant 32 : i32
    %20 = vector.broadcast %c32_i32 : i32 to vector<33x16xi32>
    %21 = arith.cmpi slt, %19, %20 : vector<33x16xi32>
    %cst_18 = arith.constant 0.000000e+00 : f32
    %22 = vector.broadcast %cst_18 : f32 to vector<33x16xf32>
    %23 = arith.maximumf %18, %22 : vector<33x16xf32>
    %24 = arith.select %21, %23, %18 : vector<33x16xi1>, vector<33x16xf32>
    %c0_19 = arith.constant 0 : index
    %c0_20 = arith.constant 0 : index
    %25 = vector.load %arg9[%c0_19, %c0_20] : memref<9x33xf32, #tpu.memory_space<vmem>>, vector<9x33xf32>
    %cst_21 = arith.constant dense<0.000000e+00> : vector<9x16xf32>
    %26 = tpu.matmul %25, %24, %cst_21 {dimension_numbers = #tpu.dot_dimension_numbers<[1], [0], [0], [1], [0, 0, 1, 1], [], []>} : vector<9x33xf32>, vector<33x16xf32>, vector<9x16xf32> -> vector<9x16xf32>
    %c0_22 = arith.constant 0 : index
    %c0_23 = arith.constant 0 : index
    %27 = vector.load %arg10[%c0_22, %c0_23] : memref<9x1xf32, #tpu.memory_space<vmem>>, vector<9x1xf32>
    %28 = vector.broadcast %27 : vector<9x1xf32> to vector<9x16xf32>
    %29 = arith.addf %26, %28 : vector<9x16xf32>
    %c0_24 = arith.constant 0 : index
    %c0_25 = arith.constant 0 : index
    %c0_26 = arith.constant 0 : index
    %30 = vector.load %arg11[%c0_24, %c0_25, %c0_26] : memref<1x9x16xf32, #tpu.memory_space<vmem>>, vector<1x9x16xf32>
    %31 = vector.shape_cast %30 : vector<1x9x16xf32> to vector<9x16xf32>
    %32 = vector.shape_cast %29 : vector<9x16xf32> to vector<1x9x16xf32>
    tpu.vector_store %arg11[%c0_24, %c0_25, %c0_26], %32 {strides = array<i32>} : memref<1x9x16xf32, #tpu.memory_space<vmem>>, vector<1x9x16xf32>,
    return
  }
  func.func @transform_0(%arg0: i32, %arg1: i32) -> (i32, i32) {
    %c0_i32 = arith.constant 0 : i32
    %c0_i32_0 = arith.constant 0 : i32
    return %c0_i32, %arg0 : i32, i32
  }
  func.func @transform_1(%arg0: i32, %arg1: i32) -> (i32, i32) {
    %c0_i32 = arith.constant 0 : i32
    %c0_i32_0 = arith.constant 0 : i32
    return %c0_i32, %arg0 : i32, i32
  }
  func.func @transform_2(%arg0: i32, %arg1: i32) -> (i32, i32) {
    %c0_i32 = arith.constant 0 : i32
    %c0_i32_0 = arith.constant 0 : i32
    %c0_i32_1 = arith.constant 0 : i32
    return %c0_i32, %c0_i32_0 : i32, i32
  }
  func.func @transform_3(%arg0: i32, %arg1: i32) -> (i32, i32, i32) {
    %c0_i32 = arith.constant 0 : i32
    %c0_i32_0 = arith.constant 0 : i32
    %c0_i32_1 = arith.constant 0 : i32
    return %arg1, %c0_i32, %c0_i32_0 : i32, i32, i32
  }
  func.func @transform_4(%arg0: i32, %arg1: i32) -> (i32, i32, i32) {
    %c0_i32 = arith.constant 0 : i32
    %c0_i32_0 = arith.constant 0 : i32
    %c0_i32_1 = arith.constant 0 : i32
    return %arg1, %c0_i32, %c0_i32_0 : i32, i32, i32
  }
  func.func @transform_5(%arg0: i32, %arg1: i32) -> (i32, i32) {
    %c0_i32 = arith.constant 0 : i32
    %c0_i32_0 = arith.constant 0 : i32
    %c0_i32_1 = arith.constant 0 : i32
    return %c0_i32, %c0_i32_0 : i32, i32
  }
  func.func @transform_6(%arg0: i32, %arg1: i32) -> (i32, i32) {
    %c0_i32 = arith.constant 0 : i32
    %c0_i32_0 = arith.constant 0 : i32
    %c0_i32_1 = arith.constant 0 : i32
    return %c0_i32, %c0_i32_0 : i32, i32
  }
  func.func @transform_7(%arg0: i32, %arg1: i32) -> (i32, i32) {
    %c0_i32 = arith.constant 0 : i32
    %c0_i32_0 = arith.constant 0 : i32
    %c0_i32_1 = arith.constant 0 : i32
    return %c0_i32, %c0_i32_0 : i32, i32
  }
  func.func @transform_8(%arg0: i32, %arg1: i32) -> (i32, i32) {
    %c0_i32 = arith.constant 0 : i32
    %c0_i32_0 = arith.constant 0 : i32
    %c0_i32_1 = arith.constant 0 : i32
    return %c0_i32, %c0_i32_0 : i32, i32
  }
  func.func @transform_9(%arg0: i32, %arg1: i32) -> (i32, i32, i32) {
    %c0_i32 = arith.constant 0 : i32
    %c0_i32_0 = arith.constant 0 : i32
    return %arg1, %c0_i32, %arg0 : i32, i32, i32
  }
}

</mosaic_0001>

<bundles_post_ra>
// kernel: tpu_custom_call.1
= control target key start
LH: loop header
LB: loop body
LE: loop exit
PB: predicated region body
PF: predicated region fallthrough
CT: control target
= control target key end

     0   :  { %s1055_s30 = smov 0   ;;  %s1057_s10 = smov 0   ;;  %s1221_s0 = inlined_call_operand.vmem [shape: f32[32,16], index: 0, kind: input, shape index: {}]   ;;  %s1222_s1 = inlined_call_operand.vmem [shape: f32[32,16], index: 1, kind: input, shape index: {}]   ;;  %s1223_s2 = inlined_call_operand.vmem [shape: f32[64,32], index: 2, kind: input, shape index: {}]   ;;  %s1224_s3 = inlined_call_operand.vmem [shape: f32[4,64,32], index: 3, kind: input, shape index: {}]   ;;  %s1225_s4 = inlined_call_operand.vmem [shape: f32[4,64,1], index: 4, kind: input, shape index: {}]   ;;  %s1226_s5 = inlined_call_operand.vmem [shape: f32[33,64], index: 5, kind: input, shape index: {}]   ;;  %s1227_s6 = inlined_call_operand.vmem [shape: f32[33,1], index: 6, kind: input, shape index: {}]   ;;  %s1228_s7 = inlined_call_operand.vmem [shape: f32[9,33], index: 7, kind: input, shape index: {}]   ;;  %s1229_s8 = inlined_call_operand.vmem [shape: f32[9,1], index: 8, kind: input, shape index: {}]   ;;  %s1230_s9 = inlined_call_operand.vmem [shape: f32[4,9,16], index: 9, kind: output, shape index: {}]  }
   0x1   :  { %s1059_s11 = smov 0  }
   0x2 LB: > { %s28_s12 = sadd.s32 1, %s998_s10  ;;  %p908_p0 = scmp.ge.s32.totalorder %s1002_s11, 1  ;;  %s1002_s11 = sphi %s1059_s11, %s19_s11   ;;  %s998_s10 = sphi %s1057_s10, %s1232_s10   ;;  %s994_s30 = sphi %s1055_s30, %s1231_s30  }
   0x3   : > { %p29_p1 = scmp.ge.s32.totalorder %s28_s12, 4  ;;  %p329_p2 = scmp.lt.s32.totalorder %s1002_s11, 5 }
   0x5   : > { %s1234_s12 = smov (%p29_p1, %s28_s12), 0  ;;  %p330_p3 = pnand %p908_p0, %p329_p2 }
   0x6   : > { %p389_p4 = scmp.lt.s32.totalorder (!%p330_p3), %s994_s30, 3 }
   0x7   : > { %333 = sbr.rel (%p330_p3) target bundleno = 523 (0x20b), region = 56 }
   0xc   : > { %v430_v0 = vld [vmem:[%s1222_s1 + $0x18] sm:$0xff]  ;;  %v429_v2 = vld [vmem:[%s1222_s1 + $0x10] sm:$0xff]  ;;  %v428_v4 = vld [vmem:[%s1222_s1 + $0x8] sm:$0xff]  ;;  %v1004_v5 = vmov 0   ;;  %s1236_s30 = smov (!%p389_p4, %s994_s30), 3  ;;  %vm431_vm0 = vcmask 261120  }
   0xd   : > { %v418_v1 = vld [vmem:[%s1221_s0 + $0x18] sm:$0xff]  ;;  %468 = vmatpush.msra.mxu0 %v430_v0  ;;  %944 = vmatpush.msra.mxu3 %v430_v0  ;;  %v417_v3 = vld [vmem:[%s1221_s0 + $0x10] sm:$0xff]  ;;  %v416_v6 = vld [vmem:[%s1221_s0 + $0x8] sm:$0xff]  ;;  %s941_s27 = sshll.u32 %s1236_s30, 6  ;;  %vm661_vm1 = vcmask 523264   ;;  %vm751_vm2 = vcmask 1040384  }
   0xe   : > { %533 = vmatpush.msra.mxu1 %v418_v1  ;;  %978 = vset.pattern.permute.xlu1 %v1004_v5  ;;  %v427_v7 = vld [vmem:[%s1222_s1] sm:$0xff]  ;;  %s1103_s15 = scalar_lea.vmem %s1225_s4, %s941_s27  ;;  %s1108_s18 = scalar_lea.vmem %s1224_s3, %s941_s27  ;;  %v408_v17 = vld [vmem:[%s1223_s2 + $0x8] sm:$0xff]  ;;  %v413_v22 = vld [vmem:[%s1223_s2 + $0x30] sm:$0xff]  ;;  %vm744_vm3 = vcmask 269312   ;;  %vm778_vm4 = vcmask 130048   ;;  %vm780_vm5 = vcmask 122880  }
   0xf   : > { %469 = vmatpush.msra.mxu0 %v429_v2  ;;  %945 = vmatpush.msra.mxu3 %v429_v2  ;;  %v415_v8 = vld [vmem:[%s1221_s0] sm:$0xff]  ;;  %v567_v9 = vld [vmem:[%s1103_s15 + $0x28] sm:$0xff]  ;;  %v425_v11 = vld [vmem:[%s1108_s18 + $0x30] sm:$0xff]  ;;  %s943_s13 = sshll.u32 %s1236_s30, 4 }
  0x10   : > { %534 = vmatpush.msra.mxu1 %v417_v3  ;;  %977 = vset.pattern.permute.xlu0 %v1004_v5  ;;  %v419_v10 = vld [vmem:[%s1108_s18] sm:$0xff]  ;;  %v569_v13 = vld [vmem:[%s1103_s15 + $0x38] sm:$0xff]  ;;  %v420_v15 = vld [vmem:[%s1108_s18 + $0x8] sm:$0xff] }
  0x11   : > { %470 = vmatpush.msra.mxu0 %v428_v4  ;;  %946 = vmatpush.msra.mxu3 %v428_v4  ;;  %v407_v12 = vld [vmem:[%s1223_s2] sm:$0xff]  ;;  %v426_v16 = vld [vmem:[%s1108_s18 + $0x38] sm:$0xff]  ;;  %v568_v18 = vld [vmem:[%s1103_s15 + $0x30] sm:$0xff] }
  0x12   : > { %535 = vmatpush.msra.mxu1 %v416_v6  ;;  %979 = vset.pattern.permute.xlu2 %v1004_v5  ;;  %v566_v14 = vld [vmem:[%s1103_s15 + $0x20] sm:$0xff]  ;;  %v565_v19 = vld [vmem:[%s1103_s15 + $0x18] sm:$0xff]  ;;  %v421_v21 = vld [vmem:[%s1108_s18 + $0x10] sm:$0xff] }
  0x13   : > { %471 = vmatpush.msra.mxu0 %v427_v7  ;;  %947 = vmatpush.msra.mxu3 %v427_v7  ;;  %v562_v20 = vld [vmem:[%s1103_s15] sm:$0xff]  ;;  %v409_v23 = vld [vmem:[%s1223_s2 + $0x10] sm:$0xff]  ;;  %v563_v24 = vld [vmem:[%s1103_s15 + $0x8] sm:$0xff] }
  0x14   : > { %536 = vmatpush.msra.mxu1 %v415_v8  ;;  %597 = vperm.xlu1 %978, %v567_v9   ;;  %v564_v25 = vld [vmem:[%s1103_s15 + $0x10] sm:$0xff]  ;;  %v422_v27 = vld [vmem:[%s1108_s18 + $0x18] sm:$0xff]  ;;  %v635_v30 = vld [vmem:[%s1227_s6 + $0x20] sm:$0x1] }
  0x15   : > { %915 = vmatmul.msk.f32.vlgmr.msra.gmra.mxu0 %vm431_vm0, %v419_v10  ;;  %921 = vmatmul.msk.f32.vlgmr.msra.gmra.mxu3 %vm431_vm0, %v425_v11  ;;  %v633_v26 = vld [vmem:[%s1227_s6 + $0x10] sm:$0xff]  ;;  %v414_v28 = vld [vmem:[%s1223_s2 + $0x38] sm:$0xff]  ;;  %v732_v32 = vld [vmem:[%s1229_s8] sm:$0xff] }
  0x16   : > { %923 = vmatmul.msk.f32.vlgmr.msra.gmra.mxu1 %vm431_vm0, %v407_v12  ;;  %607 = vperm.xlu0 %977, %v569_v13   ;;  %v410_v29 = vld [vmem:[%s1223_s2 + $0x18] sm:$0xff]  ;;  %v423_v33 = vld [vmem:[%s1108_s18 + $0x20] sm:$0xff]  ;;  %v632_v36 = vld [vmem:[%s1227_s6 + $0x8] sm:$0xff] }
  0x17   : > { %948 = vmatpush.msrb.mxu3 %v418_v1  ;;  %587 = vperm.xlu2 %979, %v565_v19   ;;  %v634_v31 = vld [vmem:[%s1227_s6 + $0x18] sm:$0xff]  ;;  %v411_v34 = vld [vmem:[%s1223_s2 + $0x20] sm:$0xff]  ;;  %v424_v37 = vld [vmem:[%s1108_s18 + $0x28] sm:$0xff]  ;;  %s406_s18 = scalar_lea.vmem %s1230_s9, %s943_s13 }
  0x18   : > { %v631_v35 = vld [vmem:[%s1227_s6] sm:$0xff]  ;;  %v412_v38 = vld [vmem:[%s1223_s2 + $0x28] sm:$0xff] }
  0x19   : > { %949 = vmatpush.msrb.mxu3 %v417_v3  ;;  %v733_v39 = vld [vmem:[%s1229_s8 + $0x8] sm:$0x1] }
  0x1b   : > { %950 = vmatpush.msrb.mxu3 %v416_v6 }
  0x1c   : > { %592 = vperm.xlu1 %978, %v566_v14  }
  0x1d   : > { %916 = vmatmul.msk.f32.gmra.mxu0 %vm431_vm0, %v420_v15  ;;  %922 = vmatmul.msk.f32.gmra.mxu3 %vm431_vm0, %v426_v16 }
  0x1e   : > { %924 = vmatmul.msk.f32.gmra.mxu1 %vm431_vm0, %v408_v17  ;;  %602 = vperm.xlu0 %977, %v568_v18  }
  0x1f   : > { %951 = vmatpush.msrb.mxu3 %v415_v8  ;;  %582 = vperm.xlu2 %979, %v564_v25   ;;  %v627_v25 = vld [vmem:[%s1226_s5 + $0x8] sm:$0xff] }
  0x24   : > { %572 = vperm.xlu1 %978, %v562_v20  }
  0x25   : > { %917 = vmatmul.msk.f32.gmra.mxu0 %vm431_vm0, %v421_v21  ;;  %929 = vmatmul.msk.f32.vlgmr.msrb.gmra.mxu3 %vm431_vm0, %v413_v22 }
  0x26   : > { %925 = vmatmul.msk.f32.gmra.mxu1 %vm431_vm0, %v409_v23  ;;  %577 = vperm.xlu0 %977, %v563_v24   ;;  %v626_v24 = vld [vmem:[%s1226_s5] sm:$0xff] }
  0x27   : > { %653 = vperm.xlu2 %979, %v634_v31  }
  0x2c   : > { %648 = vperm.xlu1 %978, %v633_v26   ;;  %v628_v26 = vld [vmem:[%s1226_s5 + $0x10] sm:$0xff] }
  0x2d   : > { %918 = vmatmul.msk.f32.gmra.mxu0 %vm431_vm0, %v422_v27  ;;  %930 = vmatmul.msk.f32.gmra.mxu3 %vm431_vm0, %v414_v28  ;;  %v629_v27 = vld [vmem:[%s1226_s5 + $0x18] sm:$0xff]  ;;  %v630_v28 = vld [vmem:[%s1226_s5 + $0x20] sm:$0x1] }
  0x2e   : > { %926 = vmatmul.msk.f32.gmra.mxu1 %vm431_vm0, %v410_v29  ;;  %658 = vperm.xlu0 %977, %v635_v30  }
  0x2f   : > { %643 = vperm.xlu2 %979, %v632_v36  }
  0x34   : > { %736 = vperm.xlu1 %978, %v732_v32  }
  0x35   : > { %919 = vmatmul.msk.f32.gmra.mxu0 %vm431_vm0, %v423_v33 }
  0x36   : > { %927 = vmatmul.msk.f32.gmra.mxu1 %vm431_vm0, %v411_v34  ;;  %638 = vperm.xlu0 %977, %v631_v35  }
  0x37   : > { %741 = vperm.xlu2 %979, %v733_v39  }
  0x3d   : > { %920 = vmatmul.msk.f32.gmra.mxu0 %vm431_vm0, %v424_v37 }
  0x3e   : > { %928 = vmatmul.msk.f32.gmra.mxu1 %vm431_vm0, %v412_v38 }
  0x71   : > { %v588_v62 = vpop.permute.xlu2 %587 }
  0x79   : > { %v583_v13 = vpop.permute.xlu2 %582 }
  0x81   : > { %v654_v32 = vpop.permute.xlu2 %653 }
  0x86   : > { %v598_v52 = vpop.permute.xlu1 %597 }
  0x88   : > { %v608_v48 = vpop.permute.xlu0 %607 }
  0x8e   : > { %v593_v0 = vpop.permute.xlu1 %592 }
  0x90   : > { %v603_v56 = vpop.permute.xlu0 %602 }
  0x92   : > { %v473_v40 = vpop.f32.mrf.mxu0 }
  0x93   : > { %v538_v41 = vpop.f32.mrf.mxu1 }
  0x94   : > { %v539_v17 = vadd.f32 %v538_v41, %v473_v40  ;;  %v644_v40 = vpop.permute.xlu2 %643 }
  0x96   : > { %v573_v16 = vpop.permute.xlu1 %572 }
  0x97   : > { %v610_v20 = vadd.f32 %v573_v16, %v539_v17 }
  0x98   : > { %v491_v42 = vpop.f32.mrf.mxu3  ;;  %v578_v12 = vpop.permute.xlu0 %577 }
  0x99   : > { %v618_v23 = vmax.f32 %v610_v20, 0.0 }
  0x9a   : > { %v476_v43 = vpop.f32.mrf.mxu0 }
  0x9b   : > { %v541_v44 = vpop.f32.mrf.mxu1 }
  0x9c   : > { %v542_v9 = vadd.f32 %v541_v44, %v476_v43 }
  0x9e   : > { %v611_v18 = vadd.f32 %v578_v12, %v542_v9  ;;  %v649_v36 = vpop.permute.xlu1 %648 }
  0xa0   : > { %v494_v45 = vpop.f32.mrf.mxu3  ;;  %v619_v22 = vmax.f32 %v611_v18, 0.0  ;;  %v659_v34 = vpop.permute.xlu0 %658 }
  0xa2   : > { %v479_v46 = vpop.f32.mrf.mxu0 }
  0xa3   : > { %v544_v47 = vpop.f32.mrf.mxu1 }
  0xa4   : > { %v545_v6 = vadd.f32 %v544_v47, %v479_v46 }
  0xa6   : > { %v612_v15 = vadd.f32 %v583_v13, %v545_v6 }
  0xa8   : > { %v556_v49 = vpop.f32.mrf.mxu3  ;;  %v620_v21 = vmax.f32 %v612_v15, 0.0  ;;  %v639_v43 = vpop.permute.xlu0 %638 }
  0xa9   : > { %v557_v53 = vadd.f32 %v556_v49, %v491_v42  ;;  %v731_v49 = vld [vmem:[%s1228_s7 + $0x8] sm:$0x1] }
  0xaa   : > { %v482_v50 = vpop.f32.mrf.mxu0 }
  0xab   : > { %v547_v51 = vpop.f32.mrf.mxu1  ;;  %v616_v60 = vadd.f32 %v603_v56, %v557_v53  ;;  %v742_v53 = vpop.permute.xlu2 %741 }
  0xac   : > { %v548_v4 = vadd.f32 %v547_v51, %v482_v50  ;;  %v737_v50 = vpop.permute.xlu1 %736 }
  0xad   : > { %v624_v63 = vmax.f32 %v616_v60, 0.0 }
  0xae   : > { %v613_v11 = vadd.f32 %v588_v62, %v548_v4 }
  0xb0   : > { %v559_v54 = vpop.f32.mrf.mxu3  ;;  %v621_v19 = vmax.f32 %v613_v11, 0.0 }
  0xb1   : > { %v560_v55 = vadd.f32 %v559_v54, %v494_v45 }
  0xb2   : > { %v485_v57 = vpop.f32.mrf.mxu0 }
  0xb3   : > { %v550_v58 = vpop.f32.mrf.mxu1  ;;  %v617_v59 = vadd.f32 %v608_v48, %v560_v55  ;;  %v730_v48 = vld [vmem:[%s1228_s7] sm:$0xff] }
  0xb4   : > { %v551_v1 = vadd.f32 %v550_v58, %v485_v57 }
  0xb5   : > { %v625_v61 = vmax.f32 %v617_v59, 0.0 }
  0xb6   : > { %v614_v8 = vadd.f32 %v593_v0, %v551_v1 }
  0xb7   : > { %685 = vmatpush.msra.mxu2 %v625_v61 }
  0xb8   : > { %v622_v14 = vmax.f32 %v614_v8, 0.0 }
  0xb9   : > { %686 = vmatpush.msra.mxu2 %v624_v63 }
  0xba   : > { %v488_v2 = vpop.f32.mrf.mxu0 }
  0xbb   : > { %v553_v3 = vpop.f32.mrf.mxu1 }
  0xbc   : > { %v554_v5 = vadd.f32 %v553_v3, %v488_v2 }
  0xbe   : > { %v615_v7 = vadd.f32 %v598_v52, %v554_v5 }
  0xc0   : > { %v623_v10 = vmax.f32 %v615_v7, 0.0 }
  0xc2   : > { %687 = vmatpush.msra.mxu2 %v623_v10 }
  0xc4   : > { %688 = vmatpush.msra.mxu2 %v622_v14 }
  0xc6   : > { %689 = vmatpush.msra.mxu2 %v621_v19 }
  0xc8   : > { %690 = vmatpush.msra.mxu2 %v620_v21 }
  0xca   : > { %691 = vmatpush.msra.mxu2 %v619_v22 }
  0xcc   : > { %692 = vmatpush.msra.mxu2 %v618_v23 }
  0xcd   : > { %931 = vmatmul.msk.f32.vlgmr.msra.gmra.mxu2 %vm661_vm1, %v626_v24 }
  0xd5   : > { %932 = vmatmul.msk.f32.gmra.mxu2 %vm661_vm1, %v627_v25 }
  0xdd   : > { %933 = vmatmul.msk.f32.gmra.mxu2 %vm661_vm1, %v628_v26 }
  0xe5   : > { %934 = vmatmul.msk.f32.gmra.mxu2 %vm661_vm1, %v629_v27 }
  0xed   : > { %935 = vmatmul.msk.f32.gmra.mxu2 %vm661_vm1, %v630_v28 }
 0x150   : > { %v694_v29 = vpop.f32.mrf.mxu2 }
 0x151   : > { %v695_v44 = vadd.f32 %v694_v29, %v639_v43 }
 0x153   : > { %v720_v47 = vmax.f32 %v695_v44, 0.0 }
 0x158   : > { %v697_v30 = vpop.f32.mrf.mxu2 }
 0x159   : > { %v698_v41 = vadd.f32 %v697_v30, %v644_v40 }
 0x15b   : > { %v721_v46 = vmax.f32 %v698_v41, 0.0 }
 0x160   : > { %v700_v31 = vpop.f32.mrf.mxu2 }
 0x161   : > { %v701_v38 = vadd.f32 %v700_v31, %v649_v36 }
 0x163   : > { %v722_v45 = vmax.f32 %v701_v38, 0.0 }
 0x168   : > { %v703_v33 = vpop.f32.mrf.mxu2 }
 0x169   : > { %v704_v35 = vadd.f32 %v703_v33, %v654_v32 }
 0x16b   : > { %v723_v42 = vmax.f32 %v704_v35, 0.0 }
 0x170   : > { %v706_v37 = vpop.f32.mrf.mxu2 }
 0x171   : > { %v707_v39 = vadd.f32 %v706_v37, %v659_v34 }
 0x173   : > { %936 = vmatpush.msk.msra.mxu3 %vm751_vm2, %v707_v39 }
 0x175   : > { %767 = vmatpush.msra.mxu3 %v723_v42 }
 0x177   : > { %768 = vmatpush.msra.mxu3 %v722_v45 }
 0x179   : > { %769 = vmatpush.msra.mxu3 %v721_v46 }
 0x17b   : > { %770 = vmatpush.msra.mxu3 %v720_v47 }
 0x17c   : > { %937 = vmatmul.msk.f32.vlgmr.msra.gmra.mxu3 %vm744_vm3, %v730_v48 }
 0x184   : > { %938 = vmatmul.msk.f32.gmra.mxu3 %vm744_vm3, %v731_v49 }
 0x1ff   : > { %v772_v51 = vpop.f32.mrf.mxu3 }
 0x200   : > { %v773_v52 = vadd.f32 %v772_v51, %v737_v50 }
 0x202   : > { %779 = vst.msk [vmem:[%s406_s18] sm:$0xff] %vm778_vm4, %v773_v52 }
 0x207   : > { %v775_v54 = vpop.f32.mrf.mxu3 }
 0x208   : > { %v776_v55 = vadd.f32 %v775_v54, %v742_v53 }
 0x20a   : > { %781 = vst.msk [vmem:[%s406_s18 + $0x8] sm:$0x1] %vm780_vm5, %v776_v55 }
 0x20b PF: > { %s19_s11 = sadd.s32 1, %s1002_s11   ;;  %s1231_s30 = smov %s998_s10 }
 0x20c   : > { %p16_p5 = scmp.ge.s32.totalorder %s19_s11, 6   ;;  %s1232_s10 = smov %s1234_s12 }
 0x20e   :  { %18 = sbr.rel (!%p16_p5) target bundleno = 2 (0x2), region = 95 }

</bundles_post_ra>
